<compile_context>
chip_gen: v5e
topology: v5e:2x2
jax: 0.10.0
libtpu: 0.0.40
codegen_flags: <defaults>
</compile_context>

<pallas_src>
from functools import lru_cache

import jax
import jax.numpy as jnp
from jax.experimental import pallas as pl
from jax.experimental.pallas import tpu as pltpu

LANES = 128
MIN_S = 8            # minimum sublane rows (one f32 vreg per component plane)
MAX_TILE_S = 512     # max sublane rows per grid step: 12*512*128*4 B = 3 MiB / block


def _triple_product_sum_kernel(pts_ref, out_ref):
    """pts_ref: (12, tile_s, 128) f32 tile of packed quads (12 component planes).
    out_ref: (tile_s, 128) f32 — per-element accumulator, resident across the grid."""
    step = pl.program_id(0)

    @pl.when(step == 0)
    def _():
        out_ref[...] = jnp.zeros_like(out_ref)

    p0x, p0y, p0z = pts_ref[0], pts_ref[1], pts_ref[2]
    ax, ay, az = pts_ref[3] - p0x, pts_ref[4] - p0y, pts_ref[5] - p0z      # p1 - p0
    bx, by, bz = pts_ref[6] - p0x, pts_ref[7] - p0y, pts_ref[8] - p0z      # p2 - p0
    cx, cy, cz = pts_ref[9] - p0x, pts_ref[10] - p0y, pts_ref[11] - p0z    # p3 - p0
    # cross(a, b) . c per quad — pure full-vreg VPU elementwise work
    nx = ay * bz - az * by
    ny = az * bx - ax * bz
    nz = ax * by - ay * bx
    dot = nx * cx + ny * cy + nz * cz
    out_ref[...] += jnp.abs(dot)


@lru_cache(maxsize=None)
def _build_triple_product_sum(S: int):
    """Compiled-once-per-bucket callable on (12, S, 128) -> scalar f32 abs-sum."""
    tile_s = min(S, MAX_TILE_S)
    num_tiles = S // tile_s
    fn = pl.pallas_call(
        _triple_product_sum_kernel,
        out_shape=jax.ShapeDtypeStruct((tile_s, LANES), jnp.float32),
        grid_spec=pltpu.PrefetchScalarGridSpec(
            num_scalar_prefetch=0,
            grid=(num_tiles,),
            in_specs=[pl.BlockSpec((12, tile_s, LANES), lambda i: (0, i, 0))],
            out_specs=pl.BlockSpec((tile_s, LANES), lambda i: (0, 0)),
        ),
        compiler_params=pltpu.CompilerParams(dimension_semantics=("arbitrary",)),
    )
    # Final cross-lane reduce is a trivial XLA op fused into the same jit.
    return jax.jit(lambda packed: jnp.sum(fn(packed)))


def _triple_product_abs_sum(packed_12_S_128: jnp.ndarray) -> jnp.ndarray:
    """packed: (12, S, 128) f32 with S a multiple of MIN_S. Returns scalar f32 sum."""
    S = packed_12_S_128.shape[1]
    return _build_triple_product_sum(int(S))(packed_12_S_128)


def _pack_quads(quads: jnp.ndarray) -> jnp.ndarray:
    """quads: (Q, 12) f32 -> (12, S, 128) zero-padded, S = MIN_S * next_pow2(rows)."""
    total = int(quads.shape[0])
    S = MIN_S * max(1, pl.next_power_of_2(pl.cdiv(total, MIN_S * LANES)))  # bucketed
    flat = jnp.zeros((12, S * LANES), jnp.float32).at[:, :total].set(quads.T)
    return flat.reshape(12, S, LANES)


def _extract_mirror_mask(batch):
    if 'mirror_mask' in batch and not bool(jnp.any(batch['mirror_mask'] < 0)):
        return jnp.squeeze(batch['mirror_mask']).astype(bool)
    return None


def _gather_fused_quads(inputs, mirror_mask, key):
    """Draw 'times' random quads per present surface, fused along the quad axis.

    Returns (quads (n_surf*times, 12) f32, times) or (None, 0).
    # TODO(synk): dynamic boolean masking + randint draws are host-side glue
    # (dynamic shapes); randomness uses jax.random, not bit-identical to torch.randint.
    """
    idx_in_mask = jnp.nonzero(mirror_mask)[0]
    M = int(idx_in_mask.shape[0])
    times = M // 4
    if times == 0:
        return None, 0
    names = [f'x_surface_{t}' for t in ('fine', 'coarse') if f'x_surface_{t}' in inputs]
    if not names:
        return None, 0
    quad_list = []
    for name in names:
        key, sub = jax.random.split(key)
        pts_in_mask = inputs[name][idx_in_mask].astype(jnp.float32)      # (M, 3)
        sel = jax.random.randint(sub, (times, 4), 0, M)                  # quad indices
        quad_list.append(pts_in_mask[sel].reshape(times, 12))            # (times, 12)
    return jnp.concatenate(quad_list, axis=0), times


def plane_consistent_loss(inputs, batch, coef=0.1, key=None):
    if key is None:
        key = jax.random.PRNGKey(1)
    mirror_mask = _extract_mirror_mask(batch)
    if mirror_mask is None:
        return jnp.float32(0.0)
    quads, times = _gather_fused_quads(inputs, mirror_mask, key)
    if times == 0:
        return jnp.float32(0.0)
    # Each surface contributes sum_abs/times; both surfaces share 'times', so the fused
    # sum divided by 'times' is exact.  Zero-padded quads contribute exactly 0.
    total = _triple_product_abs_sum(_pack_quads(quads))
    return jnp.float32(coef) * (total / jnp.float32(times))


if __name__ == "__main__":
    key = jax.random.PRNGKey(0)
    k1, k2, k3, k4 = jax.random.split(key, 4)

    N = 256  # number of rays
    x_surface_fine = jax.random.normal(k1, (N, 3), dtype=jnp.float32)
    x_surface_coarse = jax.random.normal(k2, (N, 3), dtype=jnp.float32)
    mirror_mask = (jax.random.uniform(k3, (N, 1)) > 0.5).astype(jnp.float32)

    inputs = {'x_surface_fine': x_surface_fine, 'x_surface_coarse': x_surface_coarse}
    batch = {'mirror_mask': mirror_mask}

    loss = plane_consistent_loss(inputs, batch, coef=0.1, key=k4)
    loss = jax.block_until_ready(loss)
    assert loss.shape == () and loss.dtype == jnp.float32

    # Pure-JAX reference on the exact same sampled quads (same key path).
    quads, times = _gather_fused_quads(inputs, _extract_mirror_mask(batch), k4)
    p0, p1, p2, p3 = (quads[:, 0:3], quads[:, 3:6], quads[:, 6:9], quads[:, 9:12])
    tp = jnp.sum(jnp.cross(p1 - p0, p2 - p0) * (p3 - p0), axis=-1)
    ref = jnp.float32(0.1) * jnp.sum(jnp.abs(tp)) / jnp.float32(times)
    assert jnp.allclose(loss, ref, rtol=1e-4, atol=1e-6), (loss, ref)

    print("KERNEL_OK")
</pallas_src>

<mosaic_0001>
module attributes {stable_mosaic.version = 11 : i64} {
  func.func @_triple_product_sum_kernel(%arg0: i32, %arg1: memref<12x8x128xf32, #tpu.memory_space<vmem>>, %arg2: memref<8x128xf32, #tpu.memory_space<vmem>>) attributes {dimension_semantics = [#tpu.dimension_semantics<arbitrary>], iteration_bounds = array<i64: 1>, scalar_prefetch = 0 : i64, scratch_operands = 0 : i64, tpu.core_type = #tpu.core_type<tc>, window_params = [{transform_indices = @transform_0, window_bounds = array<i64: 12, 8, 128>}, {pipeline_mode = #tpu.pipeline_mode<synchronous>, transform_indices = @transform_1, window_bounds = array<i64: 8, 128>}]} {
    %c0_i32 = arith.constant 0 : i32
    %0 = arith.cmpi eq, %arg0, %c0_i32 : i32
    %1 = arith.extui %0 : i1 to i32
    %c0_i32_0 = arith.constant 0 : i32
    %2 = arith.cmpi ne, %1, %c0_i32_0 : i32
    scf.if %2 {
      %cst = arith.constant 0.000000e+00 : f32
      %54 = vector.broadcast %cst : f32 to vector<8x128xf32>
      %c0_29 = arith.constant 0 : index
      %c0_30 = arith.constant 0 : index
      %55 = vector.load %arg2[%c0_29, %c0_30] : memref<8x128xf32, #tpu.memory_space<vmem>>, vector<8x128xf32>
      tpu.vector_store %arg2[%c0_29, %c0_30], %54 {strides = array<i32>} : memref<8x128xf32, #tpu.memory_space<vmem>>, vector<8x128xf32>,
    } else {
    }
    %c0 = arith.constant 0 : index
    %c0_1 = arith.constant 0 : index
    %c0_2 = arith.constant 0 : index
    %3 = vector.load %arg1[%c0, %c0_1, %c0_2] : memref<12x8x128xf32, #tpu.memory_space<vmem>>, vector<1x8x128xf32>
    %4 = vector.shape_cast %3 : vector<1x8x128xf32> to vector<8x128xf32>
    %c1 = arith.constant 1 : index
    %c0_3 = arith.constant 0 : index
    %c0_4 = arith.constant 0 : index
    %5 = vector.load %arg1[%c1, %c0_3, %c0_4] : memref<12x8x128xf32, #tpu.memory_space<vmem>>, vector<1x8x128xf32>
    %6 = vector.shape_cast %5 : vector<1x8x128xf32> to vector<8x128xf32>
    %c2 = arith.constant 2 : index
    %c0_5 = arith.constant 0 : index
    %c0_6 = arith.constant 0 : index
    %7 = vector.load %arg1[%c2, %c0_5, %c0_6] : memref<12x8x128xf32, #tpu.memory_space<vmem>>, vector<1x8x128xf32>
    %8 = vector.shape_cast %7 : vector<1x8x128xf32> to vector<8x128xf32>
    %c3 = arith.constant 3 : index
    %c0_7 = arith.constant 0 : index
    %c0_8 = arith.constant 0 : index
    %9 = vector.load %arg1[%c3, %c0_7, %c0_8] : memref<12x8x128xf32, #tpu.memory_space<vmem>>, vector<1x8x128xf32>
    %10 = vector.shape_cast %9 : vector<1x8x128xf32> to vector<8x128xf32>
    %11 = arith.subf %10, %4 : vector<8x128xf32>
    %c4 = arith.constant 4 : index
    %c0_9 = arith.constant 0 : index
    %c0_10 = arith.constant 0 : index
    %12 = vector.load %arg1[%c4, %c0_9, %c0_10] : memref<12x8x128xf32, #tpu.memory_space<vmem>>, vector<1x8x128xf32>
    %13 = vector.shape_cast %12 : vector<1x8x128xf32> to vector<8x128xf32>
    %14 = arith.subf %13, %6 : vector<8x128xf32>
    %c5 = arith.constant 5 : index
    %c0_11 = arith.constant 0 : index
    %c0_12 = arith.constant 0 : index
    %15 = vector.load %arg1[%c5, %c0_11, %c0_12] : memref<12x8x128xf32, #tpu.memory_space<vmem>>, vector<1x8x128xf32>
    %16 = vector.shape_cast %15 : vector<1x8x128xf32> to vector<8x128xf32>
    %17 = arith.subf %16, %8 : vector<8x128xf32>
    %c6 = arith.constant 6 : index
    %c0_13 = arith.constant 0 : index
    %c0_14 = arith.constant 0 : index
    %18 = vector.load %arg1[%c6, %c0_13, %c0_14] : memref<12x8x128xf32, #tpu.memory_space<vmem>>, vector<1x8x128xf32>
    %19 = vector.shape_cast %18 : vector<1x8x128xf32> to vector<8x128xf32>
    %20 = arith.subf %19, %4 : vector<8x128xf32>
    %c7 = arith.constant 7 : index
    %c0_15 = arith.constant 0 : index
    %c0_16 = arith.constant 0 : index
    %21 = vector.load %arg1[%c7, %c0_15, %c0_16] : memref<12x8x128xf32, #tpu.memory_space<vmem>>, vector<1x8x128xf32>
    %22 = vector.shape_cast %21 : vector<1x8x128xf32> to vector<8x128xf32>
    %23 = arith.subf %22, %6 : vector<8x128xf32>
    %c8 = arith.constant 8 : index
    %c0_17 = arith.constant 0 : index
    %c0_18 = arith.constant 0 : index
    %24 = vector.load %arg1[%c8, %c0_17, %c0_18] : memref<12x8x128xf32, #tpu.memory_space<vmem>>, vector<1x8x128xf32>
    %25 = vector.shape_cast %24 : vector<1x8x128xf32> to vector<8x128xf32>
    %26 = arith.subf %25, %8 : vector<8x128xf32>
    %c9 = arith.constant 9 : index
    %c0_19 = arith.constant 0 : index
    %c0_20 = arith.constant 0 : index
    %27 = vector.load %arg1[%c9, %c0_19, %c0_20] : memref<12x8x128xf32, #tpu.memory_space<vmem>>, vector<1x8x128xf32>
    %28 = vector.shape_cast %27 : vector<1x8x128xf32> to vector<8x128xf32>
    %29 = arith.subf %28, %4 : vector<8x128xf32>
    %c10 = arith.constant 10 : index
    %c0_21 = arith.constant 0 : index
    %c0_22 = arith.constant 0 : index
    %30 = vector.load %arg1[%c10, %c0_21, %c0_22] : memref<12x8x128xf32, #tpu.memory_space<vmem>>, vector<1x8x128xf32>
    %31 = vector.shape_cast %30 : vector<1x8x128xf32> to vector<8x128xf32>
    %32 = arith.subf %31, %6 : vector<8x128xf32>
    %c11 = arith.constant 11 : index
    %c0_23 = arith.constant 0 : index
    %c0_24 = arith.constant 0 : index
    %33 = vector.load %arg1[%c11, %c0_23, %c0_24] : memref<12x8x128xf32, #tpu.memory_space<vmem>>, vector<1x8x128xf32>
    %34 = vector.shape_cast %33 : vector<1x8x128xf32> to vector<8x128xf32>
    %35 = arith.subf %34, %8 : vector<8x128xf32>
    %36 = arith.mulf %14, %26 : vector<8x128xf32>
    %37 = arith.mulf %17, %23 : vector<8x128xf32>
    %38 = arith.subf %36, %37 : vector<8x128xf32>
    %39 = arith.mulf %17, %20 : vector<8x128xf32>
    %40 = arith.mulf %11, %26 : vector<8x128xf32>
    %41 = arith.subf %39, %40 : vector<8x128xf32>
    %42 = arith.mulf %11, %23 : vector<8x128xf32>
    %43 = arith.mulf %14, %20 : vector<8x128xf32>
    %44 = arith.subf %42, %43 : vector<8x128xf32>
    %45 = arith.mulf %38, %29 : vector<8x128xf32>
    %46 = arith.mulf %41, %32 : vector<8x128xf32>
    %47 = arith.addf %45, %46 : vector<8x128xf32>
    %48 = arith.mulf %44, %35 : vector<8x128xf32>
    %49 = arith.addf %47, %48 : vector<8x128xf32>
    %c0_25 = arith.constant 0 : index
    %c0_26 = arith.constant 0 : index
    %50 = vector.load %arg2[%c0_25, %c0_26] : memref<8x128xf32, #tpu.memory_space<vmem>>, vector<8x128xf32>
    %51 = math.absf %49 : vector<8x128xf32>
    %52 = arith.addf %50, %51 : vector<8x128xf32>
    %c0_27 = arith.constant 0 : index
    %c0_28 = arith.constant 0 : index
    %53 = vector.load %arg2[%c0_27, %c0_28] : memref<8x128xf32, #tpu.memory_space<vmem>>, vector<8x128xf32>
    tpu.vector_store %arg2[%c0_27, %c0_28], %52 {strides = array<i32>} : memref<8x128xf32, #tpu.memory_space<vmem>>, vector<8x128xf32>,
    return
  }
  func.func @transform_0(%arg0: i32) -> (i32, i32, i32) {
    %c0_i32 = arith.constant 0 : i32
    %c0_i32_0 = arith.constant 0 : i32
    %c0_i32_1 = arith.constant 0 : i32
    return %c0_i32, %arg0, %c0_i32_0 : i32, i32, i32
  }
  func.func @transform_1(%arg0: i32) -> (i32, i32) {
    %c0_i32 = arith.constant 0 : i32
    %c0_i32_0 = arith.constant 0 : i32
    %c0_i32_1 = arith.constant 0 : i32
    return %c0_i32, %c0_i32_0 : i32, i32
  }
}

</mosaic_0001>

<bundles_post_ra>
// kernel: _lambda_.1
= control target key start
LH: loop header
LB: loop body
LE: loop exit
PB: predicated region body
PF: predicated region fallthrough
CT: control target
= control target key end

     0   :  { %6 = vsyncpa [#allocation3], 0  ;;  %s114_s9 = smov [#allocation2]   ;;  %s115_s11 = smov 128   ;;  %s133_s0 = inlined_call_operand.hbm [shape: f32[12,8,128], index: 0, kind: input, shape index: {}]   ;;  %s134_s1 = inlined_call_operand.vmem [shape: f32[8,128], index: 1, kind: output, shape index: {}]  }
   0x1   :  { %s11_s8 = sshll.u32 %s133_s0, 4  ;;  %s13_s10 = sshll.u32 %s114_s9, 4  ;;  %s12_s8 = int_to_ptr.hbm [resolvable:$true] %s11_s8  ;;  %s14_s10 = int_to_ptr.vmem [resolvable:$true] %s13_s10 }
   0x2   :  { %s116_s12 = smov 8  }
   0x3   :  { %19 = dma.hbm_to_vmem [thread:$0]  %s12_s8, 1536, %s14_s10, [#allocation3], %s115_s11, %s115_s11, %s116_s12  }
   0x4   :  { %112 = dma.done.wait [#allocation3], 1536  }
   0x5   :  { %113 = vsyncadd [#allocation3], 4294965760  ;;  %v29_v0 = vld [vmem:[#allocation2] sm:$0xff]  ;;  %v31_v1 = vld [vmem:[#allocation2 + $0x8] sm:$0xff] }
   0x6   :  { %v33_v2 = vld [vmem:[#allocation2 + $0x10] sm:$0xff]  ;;  %v35_v3 = vld [vmem:[#allocation2 + $0x18] sm:$0xff]  ;;  %v38_v4 = vld [vmem:[#allocation2 + $0x20] sm:$0xff] }
   0x7   :  { %v41_v5 = vld [vmem:[#allocation2 + $0x28] sm:$0xff]  ;;  %v36_v6 = vsub.f32 %v35_v3, %v29_v0  ;;  %v39_v7 = vsub.f32 %v38_v4, %v31_v1  ;;  %v44_v9 = vld [vmem:[#allocation2 + $0x30] sm:$0xff]  ;;  %v47_v10 = vld [vmem:[#allocation2 + $0x38] sm:$0xff] }
   0x8   :  { %v42_v8 = vsub.f32 %v41_v5, %v33_v2  ;;  %v50_v11 = vld [vmem:[#allocation2 + $0x40] sm:$0xff]  ;;  %v45_v12 = vsub.f32 %v44_v9, %v29_v0  ;;  %v48_v13 = vsub.f32 %v47_v10, %v31_v1  ;;  %v53_v15 = vld [vmem:[#allocation2 + $0x48] sm:$0xff]  ;;  %v56_v16 = vld [vmem:[#allocation2 + $0x50] sm:$0xff] }
   0x9   :  { %v51_v14 = vsub.f32 %v50_v11, %v33_v2  ;;  %v59_v17 = vld [vmem:[#allocation2 + $0x58] sm:$0xff]  ;;  %v54_v18 = vsub.f32 %v53_v15, %v29_v0  ;;  %v57_v19 = vsub.f32 %v56_v16, %v31_v1 }
   0xa   :  { %v62_v21 = vmul.f32 %v48_v13, %v42_v8  ;;  %v64_v22 = vmul.f32 %v45_v12, %v42_v8  ;;  %v60_v24 = vsub.f32 %v59_v17, %v33_v2  ;;  %v67_v25 = vmul.f32 %v48_v13, %v36_v6 }
   0xb   :  { %v61_v20 = vmul.f32 %v51_v14, %v39_v7  ;;  %v65_v23 = vmul.f32 %v51_v14, %v36_v6  ;;  %v68_v26 = vmul.f32 %v45_v12, %v39_v7 }
   0xd   :  { %v63_v27 = vsub.f32 %v61_v20, %v62_v21  ;;  %v66_v28 = vsub.f32 %v64_v22, %v65_v23  ;;  %v69_v29 = vsub.f32 %v67_v25, %v68_v26 }
   0xf   :  { %v70_v30 = vmul.f32 %v63_v27, %v54_v18  ;;  %v71_v31 = vmul.f32 %v66_v28, %v57_v19  ;;  %v73_v32 = vmul.f32 %v69_v29, %v60_v24 }
  0x11   :  { %v72_v33 = vadd.f32 %v71_v31, %v70_v30 }
  0x13   :  { %v74_v34 = vadd.f32 %v73_v32, %v72_v33 }
  0x15   :  { %v76_v35 = vand.u32 2147483647, %v74_v34 }
  0x17   :  { %78 = vst [vmem:[%s134_s1] sm:$0xff] %v76_v35 }
  0x18   :  { %83 = vsyncpa [#allocation3], 1 }

</bundles_post_ra>
